<compile_context>
chip_gen: v6e
topology: v6e:2x2x1
jax: 0.10.0
libtpu: 0.0.40
codegen_flags: <defaults>
</compile_context>

<pallas_src>
import jax
import jax.numpy as jnp
from jax import lax
from jax.experimental import pallas as pl
from jax.experimental.pallas import tpu as pltpu


def _round_up(x: int, m: int) -> int:
    return ((x + m - 1) // m) * m


def _choose_tiles(B: int, block_rows: int, min_steps: int = 4, granule: int = 32):
    # granule=32: satisfies int8 sublane packing for the avail block and f32's 8.
    n_steps = max(min_steps, -(-B // max(block_rows, 1)))
    bt = _round_up(-(-B // n_steps), granule)
    bt = min(bt, _round_up(block_rows, granule))
    bt = max(bt, granule)
    b_pad = _round_up(B, bt)            # pad bounded to < bt rows (<= ~1/min_steps)
    return bt, b_pad


def _qnetwork_kernel(obs_ref, avail_ref,
                     w_repr_ref, b_repr_ref,
                     w_hs_ref, w_ids_ref,     # w_ids = w_h_ids + b_h (pre-folded)
                     w_out_ref, b_out_ref,
                     q_ref, act_ref):
    bt = obs_ref.shape[0]
    n_agents = w_ids_ref.shape[0]
    hidden = w_ids_ref.shape[1]
    n_act = q_ref.shape[-1]

    # ---- representation MLP: state = ReLU(obs @ W_repr + b_repr)   (f32 MXU)
    state = jnp.dot(obs_ref[...], w_repr_ref[...],
                    preferred_element_type=jnp.float32)
    state = jnp.maximum(state + b_repr_ref[...], 0.0)

    # ---- one-hot agent-id contribution, derived in-kernel (no HBM stream).
    # Parameter-sharing batches are env-major / agent-minor, so
    # agent index == global_row % n_agents.  b_h is already folded into w_ids.
    row0 = pl.program_id(0) * bt
    ridx = row0 + lax.broadcasted_iota(jnp.int32, (bt, 1), 0)
    aidx = ridx % n_agents
    w_ids = w_ids_ref[...]                                 # (n_agents, hidden)
    ids_h = jnp.zeros((bt, hidden), jnp.float32)
    for a in range(n_agents):                              # static unroll, tiny
        ids_h = ids_h + (aidx == a).astype(jnp.float32) * w_ids[a:a + 1, :]

    # ---- BasicQhead hidden: ReLU(concat([state, ids]) @ W_h + b_h)
    h = jnp.dot(state, w_hs_ref[...], preferred_element_type=jnp.float32) + ids_h
    h = jnp.maximum(h, 0.0)

    # ---- output layer: evalQ
    q = jnp.dot(h, w_out_ref[...], preferred_element_type=jnp.float32) + b_out_ref[...]
    q_ref[...] = q

    # ---- masked argmax (avail == 0 -> -9999999), torch tie-break = first max
    avail = avail_ref[...].astype(jnp.int32)               # int8 stream -> i32
    q_masked = jnp.where(avail == 0, jnp.float32(-9999999.0), q)
    qmax = jnp.max(q_masked, axis=-1, keepdims=True)
    idx = lax.broadcasted_iota(jnp.int32, q_masked.shape, 1).astype(jnp.float32)
    idx_or_big = jnp.where(q_masked == qmax, idx, jnp.float32(n_act))   # (bt, A)
    # Lane-dense relayout: (bt, A) -> (A, bt) on the idle XLU, reduce over
    # sublanes -> (1, bt) row, stored unmasked (no 4-byte-per-row column DMA).
    idx_t = pltpu.einshape("ab->ba", idx_or_big)
    act_row = jnp.min(idx_t, axis=0, keepdims=True)                     # (1, bt)
    act_row = jnp.minimum(act_row, jnp.float32(n_act - 1))  # NaN / all-masked guard
    act_ref[...] = act_row.astype(jnp.int32)[None]                      # (1,1,bt)


def basic_qnetwork_forward(obs, agent_ids, avail_actions, params,
                           *, block_rows=512, min_steps=4):
    """obs: [B, obs_dim] f32;  agent_ids: [B, n_agents] one-hot (API parity only:
    the kernel derives agent index as row % n_agents, which is exactly how the
    xuance parameter-sharing batch / one-hot is constructed);
    avail_actions: [B, n_actions] int8/bool 0-1 mask (int8 recommended).
    Returns (rnn_hidden_new, argmax_action [B] int32, evalQ [B, n_actions] f32)."""
    B, obs_dim = obs.shape
    repr_dim = params["w_repr"].shape[1]
    n_agents, hidden = params["w_h_ids_b"].shape
    n_actions = params["w_out"].shape[1]
    if agent_ids is not None:
        assert agent_ids.shape[-1] == n_agents

    bt, b_pad = _choose_tiles(B, block_rows, min_steps=min_steps)
    n_tiles = b_pad // bt
    grid = (n_tiles,)

    obs_in, avail_in = obs, avail_actions
    if b_pad != B:
        # Pad bounded to < bt rows; padded rows (zero obs, zero avail) produce
        # action 0 and are sliced off below.
        obs_in = jnp.pad(obs, ((0, b_pad - B), (0, 0)))
        avail_in = jnp.pad(avail_actions, ((0, b_pad - B), (0, 0)))

    def batch_spec(feat):
        return pl.BlockSpec((bt, feat), lambda i: (i, 0))

    def resident_spec(r, c):
        # Same block every grid step -> weights/biases stay VMEM-resident.
        return pl.BlockSpec((r, c), lambda i: (0, 0))

    in_specs = [
        batch_spec(obs_dim),                 # obs          f32
        batch_spec(n_actions),               # avail        int8
        resident_spec(obs_dim, repr_dim),    # w_repr
        resident_spec(1, repr_dim),          # b_repr
        resident_spec(repr_dim, hidden),     # w_h_state
        resident_spec(n_agents, hidden),     # w_h_ids + b_h (pre-folded)
        resident_spec(hidden, n_actions),    # w_out
        resident_spec(1, n_actions),         # b_out
    ]
    out_specs = (
        pl.BlockSpec((bt, n_actions), lambda i: (i, 0)),      # evalQ
        pl.BlockSpec((1, 1, bt), lambda i: (i, 0, 0)),        # act, lane-dense rows
    )
    out_shapes = (
        jax.ShapeDtypeStruct((b_pad, n_actions), jnp.float32),
        jax.ShapeDtypeStruct((n_tiles, 1, bt), jnp.int32),
    )

    weight_bytes = sum(int(params[k].size) * params[k].dtype.itemsize for k in params)
    flops = 2 * b_pad * (obs_dim * repr_dim + repr_dim * hidden + hidden * n_actions)
    bytes_accessed = (b_pad * (obs_dim * 4 + n_actions * avail_in.dtype.itemsize
                               + n_actions * 4 + 4) + weight_bytes)

    evalQ_p, act_p = pl.pallas_call(
        _qnetwork_kernel,
        grid=grid,
        in_specs=in_specs,
        out_specs=out_specs,
        out_shape=out_shapes,
        compiler_params=pltpu.CompilerParams(
            dimension_semantics=("parallel",)),
        cost_estimate=pl.CostEstimate(
            flops=int(flops), transcendentals=0,
            bytes_accessed=int(bytes_accessed)),
    )(obs_in, avail_in,
      params["w_repr"], params["b_repr"],
      params["w_h_state"], params["w_h_ids_b"],
      params["w_out"], params["b_out"])

    evalQ = evalQ_p[:B]
    argmax_action = act_p.reshape(-1)[:B]     # free row-major reshape, keepdim=False
    rnn_hidden_new = [None, None]             # use_rnn=False branch
    # TODO(synk): use_rnn=True (GRU/LSTM representation) branch is not implemented here.
    return rnn_hidden_new, argmax_action, evalQ


def init_params(key, obs_dim, repr_dim, n_agents, hidden, n_actions):
    ks = jax.random.split(key, 6)
    s = 0.1
    w_h_ids = s * jax.random.normal(ks[3], (n_agents, hidden), jnp.float32)
    b_h = s * jax.random.normal(ks[4], (1, hidden), jnp.float32)
    return {
        # representation MLP (obs_dim -> repr_dim), all f32 (matches PyTorch module)
        "w_repr": s * jax.random.normal(ks[0], (obs_dim, repr_dim), jnp.float32),
        "b_repr": s * jax.random.normal(ks[1], (1, repr_dim), jnp.float32),
        # Qhead hidden layer ((repr_dim + n_agents) -> hidden), stored split;
        # b_h pre-folded into the per-agent id rows (one row-select in-kernel).
        "w_h_state": s * jax.random.normal(ks[2], (repr_dim, hidden), jnp.float32),
        "w_h_ids_b": w_h_ids + b_h,
        # Qhead output layer (hidden -> n_actions)
        "w_out": s * jax.random.normal(ks[5], (hidden, n_actions), jnp.float32),
        "b_out": jnp.zeros((1, n_actions), jnp.float32),
    }


if __name__ == "__main__":
    key = jax.random.PRNGKey(0)

    # small, module-consistent shapes
    n_agents = 2
    n_envs = 20
    B = n_envs * n_agents           # batch of (env, agent) rows = 40
    obs_dim = 16
    repr_dim = 32                   # representation output_shapes['state'][0]
    hidden = 32                     # BasicQhead hidden_size
    n_actions = 8                   # Discrete action space

    k_obs, k_avail, k_par = jax.random.split(key, 3)
    obs = jax.random.normal(k_obs, (B, obs_dim), jnp.float32)
    # env-major / agent-minor layout (standard xuance parameter sharing):
    # agent index == row % n_agents, matching the in-kernel derivation.
    agent_idx = jnp.tile(jnp.arange(n_agents), n_envs)
    agent_ids = jax.nn.one_hot(agent_idx, n_agents, dtype=jnp.float32)
    avail = (jax.random.uniform(k_avail, (B, n_actions)) > 0.3)
    avail = avail.at[:, 0].set(True)          # at least one available action per row
    avail_i8 = avail.astype(jnp.int8)

    params = init_params(k_par, obs_dim, repr_dim, n_agents, hidden, n_actions)

    # Defaults give bt=32, b_pad=64 -> grid=(2,): exercises the multi-tile,
    # VMEM-resident-weights and padded-last-tile paths at these tiny shapes.
    rnn_hidden_new, argmax_action, evalQ = basic_qnetwork_forward(
        obs, agent_ids, avail_i8, params)
    jax.block_until_ready((argmax_action, evalQ))

    # ---- reference: plain-JAX f32 forward pass ----
    state = jnp.maximum(obs @ params["w_repr"] + params["b_repr"], 0.0)
    ids_h = agent_ids @ params["w_h_ids_b"]       # one-hot selects pre-folded rows
    h = jnp.maximum(state @ params["w_h_state"] + ids_h, 0.0)
    q_ref = h @ params["w_out"] + params["b_out"]

    assert evalQ.shape == (B, n_actions) and argmax_action.shape == (B,)
    assert jnp.allclose(evalQ, q_ref, atol=1e-2, rtol=1e-2), "evalQ mismatch"

    # masked argmax must equal torch semantics applied to the kernel's own Q
    q_masked = jnp.where(avail_i8 == 0, -9999999.0, evalQ)
    act_check = jnp.argmax(q_masked, axis=-1)
    assert jnp.array_equal(argmax_action, act_check), "argmax mismatch"

    print("KERNEL_OK")
</pallas_src>

<mosaic_0001>
module attributes {stable_mosaic.version = 11 : i64} {
  func.func @_qnetwork_kernel(%arg0: i32, %arg1: memref<32x16xf32, #tpu.memory_space<vmem>>, %arg2: memref<32x8xi8, #tpu.memory_space<vmem>>, %arg3: memref<16x32xf32, #tpu.memory_space<vmem>>, %arg4: memref<1x32xf32, #tpu.memory_space<vmem>>, %arg5: memref<32x32xf32, #tpu.memory_space<vmem>>, %arg6: memref<2x32xf32, #tpu.memory_space<vmem>>, %arg7: memref<32x8xf32, #tpu.memory_space<vmem>>, %arg8: memref<1x8xf32, #tpu.memory_space<vmem>>, %arg9: memref<32x8xf32, #tpu.memory_space<vmem>>, %arg10: memref<1x1x32xi32, #tpu.memory_space<vmem>>) attributes {dimension_semantics = [#tpu.dimension_semantics<parallel>], iteration_bounds = array<i64: 2>, scalar_prefetch = 0 : i64, scratch_operands = 0 : i64, tpu.core_type = #tpu.core_type<tc>, window_params = [{transform_indices = @transform_0, window_bounds = array<i64: 32, 16>}, {transform_indices = @transform_1, window_bounds = array<i64: 32, 8>}, {pipeline_mode = #tpu.pipeline_mode<synchronous>, transform_indices = @transform_2, window_bounds = array<i64: 16, 32>}, {pipeline_mode = #tpu.pipeline_mode<synchronous>, transform_indices = @transform_3, window_bounds = array<i64: 1, 32>}, {pipeline_mode = #tpu.pipeline_mode<synchronous>, transform_indices = @transform_4, window_bounds = array<i64: 32, 32>}, {pipeline_mode = #tpu.pipeline_mode<synchronous>, transform_indices = @transform_5, window_bounds = array<i64: 2, 32>}, {pipeline_mode = #tpu.pipeline_mode<synchronous>, transform_indices = @transform_6, window_bounds = array<i64: 32, 8>}, {pipeline_mode = #tpu.pipeline_mode<synchronous>, transform_indices = @transform_7, window_bounds = array<i64: 1, 8>}, {transform_indices = @transform_8, window_bounds = array<i64: 32, 8>}, {transform_indices = @transform_9, window_bounds = array<i64: 1, 1, 32>}]} {
    %c0 = arith.constant 0 : index
    %c0_0 = arith.constant 0 : index
    %0 = vector.load %arg1[%c0, %c0_0] : memref<32x16xf32, #tpu.memory_space<vmem>>, vector<32x16xf32>
    %c0_1 = arith.constant 0 : index
    %c0_2 = arith.constant 0 : index
    %1 = vector.load %arg3[%c0_1, %c0_2] : memref<16x32xf32, #tpu.memory_space<vmem>>, vector<16x32xf32>
    %cst = arith.constant dense<0.000000e+00> : vector<32x32xf32>
    %2 = tpu.matmul %0, %1, %cst {dimension_numbers = #tpu.dot_dimension_numbers<[1], [0], [0], [1], [0, 0, 1, 1], [], []>} : vector<32x16xf32>, vector<16x32xf32>, vector<32x32xf32> -> vector<32x32xf32>
    %c0_3 = arith.constant 0 : index
    %c0_4 = arith.constant 0 : index
    %3 = vector.load %arg4[%c0_3, %c0_4] : memref<1x32xf32, #tpu.memory_space<vmem>>, vector<1x32xf32>
    %4 = vector.broadcast %3 : vector<1x32xf32> to vector<32x32xf32>
    %5 = arith.addf %2, %4 : vector<32x32xf32>
    %cst_5 = arith.constant 0.000000e+00 : f32
    %6 = vector.broadcast %cst_5 : f32 to vector<32x32xf32>
    %7 = arith.maximumf %5, %6 : vector<32x32xf32>
    %c32_i32 = arith.constant 32 : i32
    %8 = arith.muli %arg0, %c32_i32 : i32
    %9 = tpu.iota {dimensions = array<i32: 0>} : vector<32x1xi32>
    %10 = vector.broadcast %8 : i32 to vector<32x1xi32>
    %11 = arith.addi %10, %9 : vector<32x1xi32>
    %c2_i32 = arith.constant 2 : i32
    %c0_i32 = arith.constant 0 : i32
    %12 = arith.cmpi eq, %c2_i32, %c0_i32 : i32
    %c1_i32 = arith.constant 1 : i32
    %13 = arith.select %12, %c1_i32, %c2_i32 : i32
    %14 = vector.broadcast %13 : i32 to vector<32x1xi32>
    %15 = arith.remsi %11, %14 : vector<32x1xi32>
    %c0_i32_6 = arith.constant 0 : i32
    %16 = vector.broadcast %c0_i32_6 : i32 to vector<32x1xi32>
    %17 = arith.cmpi ne, %15, %16 : vector<32x1xi32>
    %c0_i32_7 = arith.constant 0 : i32
    %18 = vector.broadcast %c0_i32_7 : i32 to vector<32x1xi32>
    %19 = arith.cmpi slt, %15, %18 : vector<32x1xi32>
    %c0_i32_8 = arith.constant 0 : i32
    %20 = arith.cmpi slt, %13, %c0_i32_8 : i32
    %21 = vector.broadcast %20 : i1 to vector<32x1xi1>
    %22 = vector.broadcast %21 : vector<32x1xi1> to vector<32x1xi1>
    %23 = arith.xori %19, %22 : vector<32x1xi1>
    %24 = arith.andi %23, %17 : vector<32x1xi1>
    %25 = vector.broadcast %13 : i32 to vector<32x1xi32>
    %26 = arith.addi %15, %25 : vector<32x1xi32>
    %27 = arith.select %24, %26, %15 : vector<32x1xi1>, vector<32x1xi32>
    %c0_9 = arith.constant 0 : index
    %c0_10 = arith.constant 0 : index
    %28 = vector.load %arg6[%c0_9, %c0_10] : memref<2x32xf32, #tpu.memory_space<vmem>>, vector<2x32xf32>
    %cst_11 = arith.constant 0.000000e+00 : f32
    %29 = vector.broadcast %cst_11 : f32 to vector<32x32xf32>
    %c0_i32_12 = arith.constant 0 : i32
    %30 = vector.broadcast %c0_i32_12 : i32 to vector<32x1xi32>
    %31 = arith.cmpi eq, %27, %30 : vector<32x1xi32>
    %32 = arith.extui %31 : vector<32x1xi1> to vector<32x1xi32>
    %33 = arith.sitofp %32 : vector<32x1xi32> to vector<32x1xf32>
    %34 = vector.extract_strided_slice %28 {offsets = [0, 0], sizes = [1, 32], strides = [1, 1]} : vector<2x32xf32> to vector<1x32xf32>
    %35 = vector.broadcast %33 : vector<32x1xf32> to vector<32x32xf32>
    %36 = vector.broadcast %34 : vector<1x32xf32> to vector<32x32xf32>
    %37 = arith.mulf %35, %36 : vector<32x32xf32>
    %38 = arith.addf %29, %37 : vector<32x32xf32>
    %c1_i32_13 = arith.constant 1 : i32
    %39 = vector.broadcast %c1_i32_13 : i32 to vector<32x1xi32>
    %40 = arith.cmpi eq, %27, %39 : vector<32x1xi32>
    %41 = arith.extui %40 : vector<32x1xi1> to vector<32x1xi32>
    %42 = arith.sitofp %41 : vector<32x1xi32> to vector<32x1xf32>
    %43 = vector.extract_strided_slice %28 {offsets = [1, 0], sizes = [1, 32], strides = [1, 1]} : vector<2x32xf32> to vector<1x32xf32>
    %44 = vector.broadcast %42 : vector<32x1xf32> to vector<32x32xf32>
    %45 = vector.broadcast %43 : vector<1x32xf32> to vector<32x32xf32>
    %46 = arith.mulf %44, %45 : vector<32x32xf32>
    %47 = arith.addf %38, %46 : vector<32x32xf32>
    %c0_14 = arith.constant 0 : index
    %c0_15 = arith.constant 0 : index
    %48 = vector.load %arg5[%c0_14, %c0_15] : memref<32x32xf32, #tpu.memory_space<vmem>>, vector<32x32xf32>
    %cst_16 = arith.constant dense<0.000000e+00> : vector<32x32xf32>
    %49 = tpu.matmul %7, %48, %cst_16 {dimension_numbers = #tpu.dot_dimension_numbers<[1], [0], [0], [1], [0, 0, 1, 1], [], []>} : vector<32x32xf32>, vector<32x32xf32>, vector<32x32xf32> -> vector<32x32xf32>
    %50 = arith.addf %49, %47 : vector<32x32xf32>
    %cst_17 = arith.constant 0.000000e+00 : f32
    %51 = vector.broadcast %cst_17 : f32 to vector<32x32xf32>
    %52 = arith.maximumf %50, %51 : vector<32x32xf32>
    %c0_18 = arith.constant 0 : index
    %c0_19 = arith.constant 0 : index
    %53 = vector.load %arg7[%c0_18, %c0_19] : memref<32x8xf32, #tpu.memory_space<vmem>>, vector<32x8xf32>
    %cst_20 = arith.constant dense<0.000000e+00> : vector<32x8xf32>
    %54 = tpu.matmul %52, %53, %cst_20 {dimension_numbers = #tpu.dot_dimension_numbers<[1], [0], [0], [1], [0, 0, 1, 1], [], []>} : vector<32x32xf32>, vector<32x8xf32>, vector<32x8xf32> -> vector<32x8xf32>
    %c0_21 = arith.constant 0 : index
    %c0_22 = arith.constant 0 : index
    %55 = vector.load %arg8[%c0_21, %c0_22] : memref<1x8xf32, #tpu.memory_space<vmem>>, vector<1x8xf32>
    %56 = vector.broadcast %55 : vector<1x8xf32> to vector<32x8xf32>
    %57 = arith.addf %54, %56 : vector<32x8xf32>
    %c0_23 = arith.constant 0 : index
    %c0_24 = arith.constant 0 : index
    %58 = vector.load %arg9[%c0_23, %c0_24] : memref<32x8xf32, #tpu.memory_space<vmem>>, vector<32x8xf32>
    tpu.vector_store %arg9[%c0_23, %c0_24], %57 {strides = array<i32>} : memref<32x8xf32, #tpu.memory_space<vmem>>, vector<32x8xf32>,
    %c0_25 = arith.constant 0 : index
    %c0_26 = arith.constant 0 : index
    %59 = vector.load %arg2[%c0_25, %c0_26] : memref<32x8xi8, #tpu.memory_space<vmem>>, vector<32x8xi8>
    %60 = arith.extsi %59 : vector<32x8xi8> to vector<32x8xi32>
    %c0_i32_27 = arith.constant 0 : i32
    %61 = vector.broadcast %c0_i32_27 : i32 to vector<32x8xi32>
    %62 = arith.cmpi eq, %60, %61 : vector<32x8xi32>
    %cst_28 = arith.constant 0xCB18967F : f32
    %63 = vector.broadcast %cst_28 : f32 to vector<32x8xf32>
    %64 = arith.select %62, %63, %57 : vector<32x8xi1>, vector<32x8xf32>
    %cst_29 = arith.constant dense<0xFF800000> : vector<32xf32>
    %65 = vector.multi_reduction <maximumf>, %64, %cst_29 [1] : vector<32x8xf32> to vector<32xf32>
    %66 = vector.shape_cast %65 : vector<32xf32> to vector<32x1xf32>
    %67 = tpu.iota {dimensions = array<i32: 1>} : vector<32x8xi32>
    %68 = arith.sitofp %67 : vector<32x8xi32> to vector<32x8xf32>
    %69 = vector.broadcast %66 : vector<32x1xf32> to vector<32x8xf32>
    %70 = arith.cmpf oeq, %64, %69 : vector<32x8xf32>
    %cst_30 = arith.constant 8.000000e+00 : f32
    %71 = vector.broadcast %cst_30 : f32 to vector<32x8xf32>
    %72 = arith.select %70, %68, %71 : vector<32x8xi1>, vector<32x8xf32>
    %73 = tpu.transpose %72, [1, 0] : vector<32x8xf32> -> vector<8x32xf32>
    %cst_31 = arith.constant dense<0x7F800000> : vector<32xf32>
    %74 = vector.multi_reduction <minimumf>, %73, %cst_31 [0] : vector<8x32xf32> to vector<32xf32>
    %75 = vector.shape_cast %74 : vector<32xf32> to vector<1x32xf32>
    %cst_32 = arith.constant 7.000000e+00 : f32
    %76 = vector.broadcast %cst_32 : f32 to vector<1x32xf32>
    %77 = arith.minimumf %75, %76 : vector<1x32xf32>
    %78 = arith.fptosi %77 : vector<1x32xf32> to vector<1x32xi32>
    %79 = vector.shape_cast %78 : vector<1x32xi32> to vector<1x1x32xi32>
    %c0_33 = arith.constant 0 : index
    %c0_34 = arith.constant 0 : index
    %c0_35 = arith.constant 0 : index
    %80 = vector.load %arg10[%c0_33, %c0_34, %c0_35] : memref<1x1x32xi32, #tpu.memory_space<vmem>>, vector<1x1x32xi32>
    tpu.vector_store %arg10[%c0_33, %c0_34, %c0_35], %79 {strides = array<i32>} : memref<1x1x32xi32, #tpu.memory_space<vmem>>, vector<1x1x32xi32>,
    return
  }
  func.func @transform_0(%arg0: i32) -> (i32, i32) {
    %c0_i32 = arith.constant 0 : i32
    %c0_i32_0 = arith.constant 0 : i32
    return %arg0, %c0_i32 : i32, i32
  }
  func.func @transform_1(%arg0: i32) -> (i32, i32) {
    %c0_i32 = arith.constant 0 : i32
    %c0_i32_0 = arith.constant 0 : i32
    return %arg0, %c0_i32 : i32, i32
  }
  func.func @transform_2(%arg0: i32) -> (i32, i32) {
    %c0_i32 = arith.constant 0 : i32
    %c0_i32_0 = arith.constant 0 : i32
    %c0_i32_1 = arith.constant 0 : i32
    return %c0_i32, %c0_i32_0 : i32, i32
  }
  func.func @transform_3(%arg0: i32) -> (i32, i32) {
    %c0_i32 = arith.constant 0 : i32
    %c0_i32_0 = arith.constant 0 : i32
    %c0_i32_1 = arith.constant 0 : i32
    return %c0_i32, %c0_i32_0 : i32, i32
  }
  func.func @transform_4(%arg0: i32) -> (i32, i32) {
    %c0_i32 = arith.constant 0 : i32
    %c0_i32_0 = arith.constant 0 : i32
    %c0_i32_1 = arith.constant 0 : i32
    return %c0_i32, %c0_i32_0 : i32, i32
  }
  func.func @transform_5(%arg0: i32) -> (i32, i32) {
    %c0_i32 = arith.constant 0 : i32
    %c0_i32_0 = arith.constant 0 : i32
    %c0_i32_1 = arith.constant 0 : i32
    return %c0_i32, %c0_i32_0 : i32, i32
  }
  func.func @transform_6(%arg0: i32) -> (i32, i32) {
    %c0_i32 = arith.constant 0 : i32
    %c0_i32_0 = arith.constant 0 : i32
    %c0_i32_1 = arith.constant 0 : i32
    return %c0_i32, %c0_i32_0 : i32, i32
  }
  func.func @transform_7(%arg0: i32) -> (i32, i32) {
    %c0_i32 = arith.constant 0 : i32
    %c0_i32_0 = arith.constant 0 : i32
    %c0_i32_1 = arith.constant 0 : i32
    return %c0_i32, %c0_i32_0 : i32, i32
  }
  func.func @transform_8(%arg0: i32) -> (i32, i32) {
    %c0_i32 = arith.constant 0 : i32
    %c0_i32_0 = arith.constant 0 : i32
    return %arg0, %c0_i32 : i32, i32
  }
  func.func @transform_9(%arg0: i32) -> (i32, i32, i32) {
    %c0_i32 = arith.constant 0 : i32
    %c0_i32_0 = arith.constant 0 : i32
    %c0_i32_1 = arith.constant 0 : i32
    return %arg0, %c0_i32, %c0_i32_0 : i32, i32, i32
  }
}

</mosaic_0001>

<bundles_post_ra>
// kernel: tpu_custom_call.1
= control target key start
LH: loop header
LB: loop body
LE: loop exit
PB: predicated region body
PF: predicated region fallthrough
CT: control target
= control target key end

     0   :  { %15 = vsyncpa [#allocation3], 0  ;;  %s1430_s0 = inlined_call_operand.vmem [shape: f32[64,16], index: 0, kind: input, shape index: {}]   ;;  %s1431_s1 = inlined_call_operand.vmem [shape: s8[64,8], index: 1, kind: input, shape index: {}]   ;;  %s1432_s2 = inlined_call_operand.vmem [shape: f32[16,32], index: 2, kind: input, shape index: {}]   ;;  %s1433_s3 = inlined_call_operand.vmem [shape: f32[1,32], index: 3, kind: input, shape index: {}]   ;;  %s1434_s4 = inlined_call_operand.vmem [shape: f32[32,32], index: 4, kind: input, shape index: {}]   ;;  %s1435_s5 = inlined_call_operand.vmem [shape: f32[2,32], index: 5, kind: input, shape index: {}]   ;;  %s1436_s6 = inlined_call_operand.vmem [shape: f32[32,8], index: 6, kind: input, shape index: {}]   ;;  %s1437_s7 = inlined_call_operand.vmem [shape: f32[1,8], index: 7, kind: input, shape index: {}]   ;;  %s1438_s8 = inlined_call_operand.vmem [shape: f32[64,8], index: 8, kind: output, shape index: {0}]   ;;  %s1439_s9 = inlined_call_operand.hbm [shape: s32[2,1,32], index: 9, kind: output, shape index: {1}]  }
   0x1   :  { %17 = vsyncpa [#allocation3 + $0x1], 0  ;;  %s1271_s30 = smov 0   ;;  %s1273_s10 = smov 0  }
   0x2   :  { %s1275_s11 = smov 0   ;;  %s1277_s12 = smov 0  }
   0x3 LB: > { %s1292_s13 = sadd.s32 4294967295, %s1217_s12   ;;  %s1006_s14 = sadd.s32 4294967294, %s1217_s12   ;;  %s1217_s12 = sphi %s1277_s12, %s1445_s12   ;;  %s1213_s11 = sphi %s1275_s11, %s1444_s11   ;;  %s1209_s10 = sphi %s1273_s10, %s1443_s10   ;;  %s1205_s30 = sphi %s1271_s30, %s1442_s30  }
   0x4   : > { %s1296_s15 = sadd.s32 1, %s1217_s12   ;;  %s234_s16 = sadd.s32 1, %s1213_s11 }
   0x5   : > { %s231_s17 = ssub.s32 %s1217_s12, %s1296_s15  ;;  %p244_p0 = scmp.ne.s32.totalorder %s1213_s11, %s1209_s10 }
   0x6   : > { %p232_p1 = scmp.eq.s32.totalorder %s231_s17, 0  ;;  %p245_p2 = scmp.eq.s32.totalorder %s1292_s13, 1 }
   0x7   : > { %p250_p3 = scmp.ne.s32.totalorder %s1209_s10, %s1205_s30  ;;  %p251_p4 = scmp.eq.s32.totalorder %s1006_s14, 1 }
   0x8   : > { %s1307_s18 = scalar_select %p232_p1, %s1213_s11, %s234_s16  }
   0x9   : > { %p1309_p5 = por %p245_p2, %p244_p0  ;;  %p1313_p6 = por %p251_p4, %p250_p3 }
   0xa   : > { %p1009_p7 = scmp.ge.s32.totalorder %s1217_s12, 1  ;;  %p305_p8 = scmp.lt.s32.totalorder %s1217_s12, 3 }
   0xc   : > { %p306_p9 = pnand %p1009_p7, %p305_p8 }
   0xd   : > { %s1010_s25 = sshll.u32 (!%p306_p9), %s1292_s13, 2  ;;  %s1021_s28 = sshll.u32 (!%p306_p9), %s1292_s13, 5 }
   0xe   : > { %309 = sbr.rel (%p306_p9) target bundleno = 920 (0x398), region = 52  ;;  %p351_p10 = scmp.lt.s32.totalorder (!%p306_p9), %s1010_s25, 7 }
   0xf   : > { %s1220_s27 = smov (!%p306_p9), [#allocation2]  }
  0x13   : > { %v373_v0 = vld [vmem:[%s1432_s2 + $0x8] sm:$0xff]  ;;  %v372_v1 = vld [vmem:[%s1432_s2] sm:$0xff]  ;;  %s1447_s25 = smov (!%p351_p10, %s1010_s25), 7  ;;  %vm381_vm0 = vcmask 130048   ;;  %v594_v6 = vld [vmem:[%s1434_s4 + $0x18] sm:$0xff]  ;;  %vm595_vm1 = vcmask 261120   ;;  %v484_v27 = vlaneseq  ;;  %v489_v30 = vstv %s1021_s28 }
  0x14   : > { %1076 = vmatprep.subr.mxu0 %v373_v0  ;;  %s1011_s26 = sshll.u32 %s1447_s25, 3  ;;  %1086 = vmatprep.subr.mxu1 %v594_v6  ;;  %v593_v7 = vld [vmem:[%s1434_s4 + $0x10] sm:$0xff]  ;;  %v592_v8 = vld [vmem:[%s1434_s4 + $0x8] sm:$0xff]  ;;  %v591_v9 = vld [vmem:[%s1434_s4] sm:$0xff]  ;;  %s1013_s16 = sshll.u32 %s1447_s25, 1 }
  0x15   : > { %1077 = vmatpush3.msra.mxu0 %v373_v0  ;;  %s354_s29 = scalar_lea.vmem %s1430_s0, %s1011_s26  ;;  %1087 = vmatpush3.msra.mxu1 %v594_v6  ;;  %v700_v10 = vld [vmem:[%s1436_s6 + $0x18] sm:$0xff]  ;;  %v1016_v11 = vld [vmem:[%s1433_s3] ss:$0 sm:$0xff]  ;;  %v699_v24 = vld [vmem:[%s1436_s6 + $0x10] sm:$0xff]  ;;  %v485_v28 = vshrl.u32 %v484_v27, 7  ;;  %v1219_v6 = vmov 0.0   ;;  %s360_s22 = scalar_lea.vmem %s1431_s1, %s1013_s16 }
  0x16   : > { %1078 = vmatprep.subr.mxu0 %v372_v1  ;;  %v368_v2 = vld [vmem:[%s354_s29] sm:$0xff]  ;;  %v369_v3 = vld [vmem:[%s354_s29 + $0x8] sm:$0xff]  ;;  %v370_v4 = vld [vmem:[%s354_s29 + $0x10] sm:$0xff]  ;;  %1088 = vmatprep.subr.mxu1 %v593_v7  ;;  %s348_s25 = sand.u32 1, %s1209_s10   ;;  %s1161_s28 = sshll.u32 %s1220_s27, 4  ;;  %s1162_s28 = int_to_ptr.vmem [resolvable:$false] %s1161_s28 }
  0x17   : > { %1079 = vmatpush3.msra.mxu0 %v372_v1  ;;  %1080 = vmatprep.mubr.msk.f32.mxu0 %vm381_vm0, %v368_v2  ;;  %v371_v5 = vld [vmem:[%s354_s29 + $0x18] sm:$0xff]  ;;  %v698_v25 = vld [vmem:[%s1436_s6 + $0x8] sm:$0xff]  ;;  %v697_v26 = vld [vmem:[%s1436_s6] sm:$0xff]  ;;  %v486_v29 = vadd.s32 8, %v485_v28  ;;  %v488_v32 = vadd.s32 24, %v485_v28  ;;  %v490_v33 = vadd.s32 %v489_v30, %v485_v28  ;;  %v487_v34 = vadd.s32 16, %v485_v28  ;;  %s366_s29 = scalar_lea.vmem %s1438_s8, %s1011_s26 }
  0x18   : > { %1081 = vmatmul.mubr.msk.f32.vlgmr.msra.gmra.mxu0 %vm381_vm0, %v369_v3  ;;  %1089 = vmatpush3.msra.mxu1 %v593_v7  ;;  %v557_v61 = vsub.s32 0, %v485_v28  ;;  %v581_v62 = vsub.s32 1, %v485_v28  ;;  %v542_v1 = vld [vmem:[%s1435_s5] sm:$0x3]  ;;  %s1043_s26 = sshll.u32 %s1292_s13, 4  ;;  %s349_s14 = scalar_lea.vmem [#allocation2], %s348_s25 }
  0x19   : > { %1083 = vmatprep.mubr.msk.f32.mxu0 %vm381_vm0, %v370_v4  ;;  %1090 = vmatprep.subr.mxu1 %v592_v8  ;;  %v491_v31 = vadd.s32 %v489_v30, %v486_v29  ;;  %v493_v36 = vadd.s32 %v489_v30, %v488_v32  ;;  %v495_v37 = vsub.s32 0, %v490_v33  ;;  %v492_v38 = vadd.s32 %v489_v30, %v487_v34  ;;  %s914_s16 = sshll.u32 %s349_s14, 4  ;;  %s898_s23 = scalar_lea.sflag [#allocation3], %s348_s25  ;;  %s915_s16 = int_to_ptr.vmem [resolvable:$true] %s914_s16 }
  0x1a   : > { %1091 = vmatpush3.msra.mxu1 %v592_v8  ;;  %1100 = vmatprep.subr.mxu0 %v700_v10  ;;  %vm494_vm3 = vcmp.lt.s32.totalorder %v490_v33, 0  ;;  %v558_v3 = vrot.slane %v542_v1, %v557_v61  ;;  %v582_v4 = vrot.slane %v542_v1, %v581_v62  ;;  %v839_v62 = vand.u32 127, %v484_v27  ;;  %s1157_s24 = scalar_lea.vmem %s915_s16, 16  ;;  %s1163_s13 = scalar_lea.vmem %s1162_s28, 32 }
  0x1b   : > { %1092 = vmatprep.subr.mxu1 %v591_v9  ;;  %1101 = vmatpush3.msra.mxu0 %v700_v10  ;;  %v502_v35 = vsub.s32 0, %v491_v31  ;;  %v516_v40 = vsub.s32 0, %v493_v36  ;;  %v1022_v41 = vmin.u32 %v495_v37, %v490_v33  ;;  %v509_v42 = vsub.s32 0, %v492_v38  ;;  %p1158_p11 = scmp.ne.s32.totalorder %s915_s16, %s1157_s24  ;;  %p1164_p0 = scmp.lt.s32.totalorder %s915_s16, %s1162_s28 }
  0x1c   : > { %1084 = vmatmul.mubr.msk.f32.gmra.mxu0 %vm381_vm0, %v371_v5  ;;  %1093 = vmatpush3.msra.mxu1 %v591_v9  ;;  %vm501_vm2 = vcmp.lt.s32.totalorder %v491_v31, 0  ;;  %vm515_vm4 = vcmp.lt.s32.totalorder %v493_v36, 0  ;;  %vm508_vm5 = vcmp.lt.s32.totalorder %v492_v38, 0  ;;  %p1165_p1 = scmp.lt.s32.totalorder %s1163_s13, %s1157_s24 }
  0x1d   : > { %1102 = vmatprep.subr.mxu0 %v699_v24  ;;  %v1023_v39 = vmin.u32 %v502_v35, %v491_v31  ;;  %v1025_v44 = vmin.u32 %v516_v40, %v493_v36  ;;  %v498_v45 = vand.u32 1, %v1022_v41  ;;  %v1024_v46 = vmin.u32 %v509_v42, %v492_v38  ;;  %v1047_v40 = vld [vmem:[%s360_s22] sm:$0xff]   ;;  %s912_s22 = scalar_lea.hbm %s1439_s9, %s1043_s26  ;;  %p1159_p12 = pnand %p1158_p11, %p1309_p5 }
  0x1e   : > { %1103 = vmatpush3.msra.mxu0 %v699_v24  ;;  %v1048_v41 = vunpack.c.0.s8 %v1047_v40  ;;  %p1166_p2 = por %p1165_p1, %p1164_p0 }
  0x1f   : > { %1104 = vmatprep.subr.mxu0 %v698_v25  ;;  %v505_v43 = vand.u32 1, %v1023_v39  ;;  %v519_v48 = vand.u32 1, %v1025_v44  ;;  %v499_v49 = vsub.s32 0, %v498_v45  ;;  %v512_v50 = vand.u32 1, %v1024_v46  ;;  %p1160_p13 = pneg %p1159_p12 }
  0x20   : > { %1105 = vmatpush3.msra.mxu0 %v698_v25  ;;  %v1049_v44 = vunpack.c.1.s8 %v1047_v40  ;;  %v1052_v46 = vunpack.c.2.s8 %v1047_v40 }
  0x21   : > { %1106 = vmatprep.subr.mxu0 %v697_v26  ;;  %v506_v47 = vsub.s32 0, %v505_v43  ;;  %v520_v52 = vsub.s32 0, %v519_v48  ;;  %v500_v53 = vsel %vm494_vm3, %v499_v49, %v498_v45  ;;  %v513_v54 = vsub.s32 0, %v512_v50  ;;  %p1167_p3 = pnand %p1166_p2, %p1160_p13 }
  0x22   : > { %1107 = vmatpush3.msra.mxu0 %v697_v26  ;;  %vm522_vm8 = vcmp.ne.s32.totalorder %v500_v53, 0  ;;  %vm526_vm9 = vcmp.lt.s32.totalorder %v500_v53, 0  ;;  %v534_v58 = vadd.s32 2, %v500_v53 }
  0x23   : > { %v507_v51 = vsel %vm501_vm2, %v506_v47, %v505_v43  ;;  %v521_v55 = vsel %vm515_vm4, %v520_v52, %v519_v48  ;;  %v514_v57 = vsel %vm508_vm5, %v513_v54, %v512_v50  ;;  %vm530_vm11 = vmand %vm526_vm9, %vm522_vm8  ;;  %v1038_v43 = vld [vmem:[%s1437_s7] ss:$0 sm:$0xff]  ;;  %v1053_v50 = vunpack.c.3.s8 %v1047_v40 }
  0x24   : > { %vm523_vm6 = vcmp.ne.s32.totalorder %v507_v51, 0  ;;  %vm527_vm7 = vcmp.lt.s32.totalorder %v507_v51, 0  ;;  %v535_v56 = vadd.s32 2, %v507_v51  ;;  %vm525_vm12 = vcmp.ne.s32.totalorder %v521_v55, 0 }
  0x25   : > { %vm531_vm10 = vmand %vm527_vm7, %vm523_vm6  ;;  %vm529_vm13 = vcmp.lt.s32.totalorder %v521_v55, 0  ;;  %vm524_vm14 = vcmp.ne.s32.totalorder %v514_v57, 0  ;;  %vm528_vm15 = vcmp.lt.s32.totalorder %v514_v57, 0  ;;  %v537_v60 = vadd.s32 2, %v521_v55 }
  0x26   : > { %v539_v59 = vsel %vm531_vm10, %v535_v56, %v507_v51  ;;  %v538_v63 = vsel %vm530_vm11, %v534_v58, %v500_v53  ;;  %vm533_vm0 = vmand %vm529_vm13, %vm525_vm12  ;;  %v536_v0 = vadd.s32 2, %v514_v57  ;;  %vm805_vm11 = vcmask 64512  }
  0x27   : > { %vm532_vm2 = vmand %vm528_vm15, %vm524_vm14  ;;  %vm544_vm3 = vcmp.eq.s32.totalorder %v539_v59, 0  ;;  %vm568_vm4 = vcmp.eq.s32.totalorder %v539_v59, 1  ;;  %vm543_vm5 = vcmp.eq.s32.totalorder %v538_v63, 0  ;;  %vm567_vm6 = vcmp.eq.s32.totalorder %v538_v63, 1 }
  0x28   : > { %v541_v2 = vsel %vm533_vm0, %v537_v60, %v521_v55  ;;  %v540_v5 = vsel %vm532_vm2, %v536_v0, %v514_v57  ;;  %v1027_v7 = vsel %vm544_vm3, 1.0, %v1219_v6  ;;  %v1031_v8 = vsel %vm568_vm4, 1.0, %v1219_v6 }
  0x29   : > { %v1026_v9 = vsel %vm543_vm5, 1.0, %v1219_v6  ;;  %v1030_v10 = vsel %vm567_vm6, 1.0, %v1219_v6  ;;  %vm546_vm7 = vcmp.eq.s32.totalorder %v541_v2, 0  ;;  %vm570_vm8 = vcmp.eq.s32.totalorder %v541_v2, 1 }
  0x2a   : > { %vm545_vm9 = vcmp.eq.s32.totalorder %v540_v5, 0  ;;  %vm569_vm10 = vcmp.eq.s32.totalorder %v540_v5, 1  ;;  %vm818_vm12 = vcmp.eq.s32.totalorder %v1048_v41, 0  ;;  %vm819_vm13 = vcmp.eq.s32.totalorder %v1049_v44, 0 }
  0x2b   : > { %vm820_vm14 = vcmp.eq.s32.totalorder %v1052_v46, 0  ;;  %vm821_vm15 = vcmp.eq.s32.totalorder %v1053_v50, 0  ;;  %v840_v63 = vcvt.s32.f32 %v839_v62  ;;  %vm890_vm5 = vcmask 253952  }
  0xd8   : > { %v1082_v12 = vpop.f32.mrf.mxu0 }
  0xd9   : > { %v466_v13 = vadd.f32 %v1082_v12, %v1016_v11  ;;  %v584_v12 = vmul.f32 %v1031_v8, %v582_v4 }
  0xda   : > { %v460_v14 = vpop.f32.mrf.mxu0 }
  0xdb   : > { %v461_v15 = vadd.f32 %v1016_v11, %v460_v14  ;;  %v480_v19 = vmax.f32 %v466_v13, 0.0  ;;  %v559_v13 = vmul.f32 %v1026_v9, %v558_v3  ;;  %v583_v14 = vmul.f32 %v1030_v10, %v582_v4 }
  0xdc   : > { %v1085_v16 = vpop.f32.mrf.mxu0 }
  0xdd   : > { %v479_v17 = vmax.f32 %v461_v15, 0.0  ;;  %v476_v18 = vadd.f32 %v1085_v16, %v1016_v11  ;;  %v1029_v15 = vsel %vm546_vm7, 1.0, %v1219_v6  ;;  %v1033_v16 = vsel %vm570_vm8, 1.0, %v1219_v6 }
  0xde   : > { %v470_v20 = vpop.f32.mrf.mxu0 }
  0xdf   : > { %v471_v21 = vadd.f32 %v1016_v11, %v470_v20  ;;  %1094 = vmatprep.mubr.msk.f32.mxu1 %vm595_vm1, %v479_v17  ;;  %v482_v22 = vmax.f32 %v476_v18, 0.0  ;;  %v560_v11 = vmul.f32 %v1027_v7, %v558_v3  ;;  %v1028_v17 = vsel %vm545_vm9, 1.0, %v1219_v6 }
  0xe0   : > { %1095 = vmatmul.mubr.msk.f32.vlgmr.msra.gmra.mxu1 %vm595_vm1, %v480_v19  ;;  %v1032_v18 = vsel %vm569_vm10, 1.0, %v1219_v6  ;;  %v562_v20 = vmul.f32 %v1029_v15, %v558_v3 }
  0xe1   : > { %v481_v23 = vmax.f32 %v471_v21, 0.0  ;;  %v588_v19 = vadd.f32 %v584_v12, %v560_v11  ;;  %v586_v21 = vmul.f32 %v1033_v16, %v582_v4  ;;  %v585_v24 = vmul.f32 %v1032_v18, %v582_v4 }
  0xe3   : > { %1097 = vmatprep.mubr.msk.f32.mxu1 %vm595_vm1, %v481_v23  ;;  %v561_v23 = vmul.f32 %v1028_v17, %v558_v3  ;;  %v590_v29 = vadd.f32 %v586_v21, %v562_v20 }
  0xe4   : > { %1098 = vmatmul.mubr.msk.f32.gmra.mxu1 %vm595_vm1, %v482_v22  ;;  %v587_v22 = vadd.f32 %v583_v14, %v559_v13 }
  0xe5   : > { %v589_v31 = vadd.f32 %v585_v24, %v561_v23 }
 0x1a0   : > { %v1096_v25 = vpop.f32.mrf.mxu1 }
 0x1a1   : > { %v680_v26 = vadd.f32 %v1096_v25, %v588_v19 }
 0x1a2   : > { %v674_v28 = vpop.f32.mrf.mxu1 }
 0x1a3   : > { %v675_v30 = vadd.f32 %v674_v28, %v587_v22  ;;  %v694_v34 = vmax.f32 %v680_v26, 0.0 }
 0x1a4   : > { %v1099_v32 = vpop.f32.mrf.mxu1 }
 0x1a5   : > { %v693_v33 = vmax.f32 %v675_v30, 0.0  ;;  %v690_v35 = vadd.f32 %v1099_v32, %v590_v29 }
 0x1a6   : > { %v684_v36 = vpop.f32.mrf.mxu1 }
 0x1a7   : > { %v685_v37 = vadd.f32 %v684_v36, %v589_v31  ;;  %1108 = vmatprep.mubr.msk.f32.mxu0 %vm595_vm1, %v693_v33  ;;  %v696_v39 = vmax.f32 %v690_v35, 0.0 }
 0x1a8   : > { %1109 = vmatmul.mubr.msk.f32.vlgmr.msra.gmra.mxu0 %vm595_vm1, %v694_v34 }
 0x1a9   : > { %v695_v38 = vmax.f32 %v685_v37, 0.0 }
 0x1ab   : > { %1111 = vmatprep.mubr.msk.f32.mxu0 %vm595_vm1, %v695_v38 }
 0x1ac   : > { %1112 = vmatmul.mubr.msk.f32.gmra.mxu0 %vm595_vm1, %v696_v39 }
 0x268   : > { %v1110_v42 = vpop.f32.mrf.mxu0 }
 0x269   : > { %v792_v47 = vadd.f32 %v1110_v42, %v1038_v43 }
 0x26a   : > { %v786_v45 = vpop.f32.mrf.mxu0 }
 0x26b   : > { %v787_v48 = vadd.f32 %v1038_v43, %v786_v45  ;;  %807 = vst.msk [vmem:[%s366_s29 + $0x8] sm:$0xff] %vm805_vm11, %v792_v47  ;;  %v823_v56 = vsel %vm819_vm13, -9999999.0, %v792_v47 }
 0x26c   : > { %v1113_v49 = vpop.f32.mrf.mxu0  ;;  %v829_v59 = vsel %vm805_vm11, %v823_v56, -inf }
 0x26d   : > { %806 = vst.msk [vmem:[%s366_s29] sm:$0xff] %vm805_vm11, %v787_v48  ;;  %v822_v51 = vsel %vm818_vm12, -9999999.0, %v787_v48  ;;  %v802_v54 = vadd.f32 %v1113_v49, %v1038_v43 }
 0x26e   : > { %v796_v52 = vpop.f32.mrf.mxu0  ;;  %v826_v53 = vsel %vm805_vm11, %v822_v51, -inf }
 0x26f   : > { %v797_v55 = vadd.f32 %v1038_v43, %v796_v52  ;;  %827 = vmax.xlane.f32.xlu0 %v826_v53  ;;  %809 = vst.msk [vmem:[%s366_s29 + $0x18] sm:$0xff] %vm805_vm11, %v802_v54  ;;  %v825_v60 = vsel %vm821_vm15, -9999999.0, %v802_v54 }
 0x270   : > { %v835_v61 = vsel %vm805_vm11, %v825_v60, -inf }
 0x271   : > { %808 = vst.msk [vmem:[%s366_s29 + $0x10] sm:$0xff] %vm805_vm11, %v797_v55  ;;  %v824_v57 = vsel %vm820_vm14, -9999999.0, %v797_v55 }
 0x272   : > { %v832_v58 = vsel %vm805_vm11, %v824_v57, -inf }
 0x273   : > { %833 = vmax.xlane.f32.xlu1 %v832_v58  ;;  %830 = vmax.xlane.f32.xlu0 %v829_v59 }
 0x277   : > { %836 = vmax.xlane.f32.xlu1 %v835_v61 }
 0x2f8   : > { %v828_v0 = vpop.xlane.xlu0 %827 }
 0x2f9   : > { %vm841_vm0 = vcmp.eq.f32.partialorder %v822_v51, %v828_v0 }
 0x2fa   : > { %v845_v1 = vsel %vm841_vm0, %v840_v63, 8.0 }
 0x2fb   : > { %849 = vxpose.xlu0.b32.start [1/4] (short) (narrow) %v845_v1, 8 }
 0x2fc   : > { %v834_v2 = vpop.xlane.xlu1 %833  ;;  %v831_v3 = vpop.xlane.xlu0 %830 }
 0x2fd   : > { %vm842_vm2 = vcmp.eq.f32.partialorder %v823_v56, %v831_v3  ;;  %vm843_vm3 = vcmp.eq.f32.partialorder %v824_v57, %v834_v2 }
 0x2fe   : > { %v846_v4 = vsel %vm842_vm2, %v840_v63, 8.0  ;;  %v847_v6 = vsel %vm843_vm3, %v840_v63, 8.0 }
 0x2ff   : > { %850 = vxpose.xlu0.b32.cont [2/4] (short) (narrow) %v846_v4, 8 }
 0x300   : > { %v837_v5 = vpop.xlane.xlu1 %836 }
 0x301   : > { %vm844_vm4 = vcmp.eq.f32.partialorder %v825_v60, %v837_v5 }
 0x302   : > { %v848_v7 = vsel %vm844_vm4, %v840_v63, 8.0 }
 0x303   : > { %851 = vxpose.xlu0.b32.cont [3/4] (short) (narrow) %v847_v6, 8 }
 0x307   : > { %852 = vxpose.xlu0.b32.end [4/4] (short) (narrow) %v848_v7, 8 }
 0x377   : > { %v865_v27 = vpop.trf.xlu0 }
 0x378   : > { %v881_v8 = vsel %vm595_vm1, %v865_v27, inf }
 0x379   : > { %v882_v9 = vrot.slane %v881_v8, 4 }
 0x37b   : > { %v883_v10 = vmin.f32 %v881_v8, %v882_v9 }
 0x37d   : > { %v884_v11 = vrot.slane %v883_v10, 2 }
 0x37f   : > { %v885_v12 = vmin.f32 %v883_v10, %v884_v11 }
 0x381   : > { %v886_v13 = vrot.slane %v885_v12, 1 }
 0x383   : > { %v887_v14 = vmin.f32 %v885_v12, %v886_v13 }
 0x385   : > { %v888_v15 = vmin.f32 %v887_v14, 7.0 }
 0x387   : > { %v1115_v16 = vtrunc.f32 %v888_v15 }
 0x389   : > { %v1116_v17 = vcvt.f32.s32 %v1115_v16 }
 0x38b   : > { %891 = vst.msk [vmem:[%s349_s14] sm:$0x1] %vm890_vm5, %v1116_v17 }
 0x38c   : > { %1170 = shalt.err (!%p1167_p3)
}
 0x38d   : > { %s1171_s29 = scalar_lea.hbm %s912_s22, 16  ;;  %s1175_s14 = scalar_lea.hbm %s1439_s9, 32 }
 0x38e   : > { %p1172_p4 = scmp.ne.s32.totalorder %s912_s22, %s1171_s29  ;;  %p1176_p9 = scmp.lt.s32.totalorder %s912_s22, %s1439_s9 }
 0x38f   : > { %p1177_p10 = scmp.lt.s32.totalorder %s1175_s14, %s1171_s29 }
 0x390   : > { %p1173_p7 = pnand %p1172_p4, %p1309_p5 }
 0x391   : > { %p1178_p11 = por %p1177_p10, %p1176_p9 }
 0x392   : > { %p1174_p8 = pneg %p1173_p7 }
 0x394   : > { %p1179_p12 = pnand %p1178_p11, %p1174_p8 }
 0x396   : > { %1182 = shalt.err (!%p1179_p12)
}
 0x397   : > { %1117 = dma.vmem_to_hbm [thread:$0]  (%p1309_p5), %s915_s16, 16, %s912_s22, %s898_s23  }
 0x398 PF: > { %p1123_p13 = scmp.ge.s32.totalorder %s1217_s12, 2  ;;  %s934_s24 = sand.u32 1, %s1205_s30  }
 0x399   : > { %s935_s27 = scalar_lea.sflag [#allocation3], %s934_s24 }
 0x39a   : > { %p1120_p0 = pnand %p1123_p13, %p1313_p6 }
 0x39c   : > { %p1121_p1 = pneg %p1120_p0 }
 0x39e   : > { %1200 = dma.done.wait (%p1121_p1), %s935_s27, 16  }
 0x39f   : > { %1202 = vsyncadd (%p1121_p1), %s935_s27, 4294967280  ;;  %p20_p2 = scmp.ge.s32.totalorder %s1296_s15, 4   ;;  %s1442_s30 = smov %s1209_s10 }
 0x3a0   : > { %s1443_s10 = smov %s1213_s11  ;;  %s1444_s11 = smov %s1307_s18 }
 0x3a1   : > { %s1445_s12 = smov %s1296_s15  ;;  %22 = sbr.rel (!%p20_p2) target bundleno = 3 (0x3), region = 102 }
 0x3a6   :  { %939 = vsyncpa [#allocation3], 1 }
 0x3a7   :  { %941 = vsyncpa [#allocation3 + $0x1], 1 }

</bundles_post_ra>
